<compile_context>
chip_gen: v5e
topology: v5e:2x2
jax: 0.10.0
libtpu: 0.0.40
codegen_flags: <defaults>
</compile_context>

<pallas_src>
import numpy as np

import jax
import jax.numpy as jnp
from jax.experimental import pallas as pl
from jax.experimental.pallas import tpu as pltpu


# ----------------------------- adaLN branch ---------------------------------

def adaln_kernel(c_ref, w_ada_ref, b_ada_ref, shift_ref, ops_ref):
    # c: (N, H)  w_ada: (H, 2H)  b_ada: (1, 2H)  -> shift: (N, H), 1+scale: (N, H)
    c = c_ref[...].astype(jnp.float32)
    c_silu = c * jax.nn.sigmoid(c)                         # SiLU in f32 (EUP)
    ada = jnp.dot(c_silu.astype(w_ada_ref.dtype), w_ada_ref[...],
                  preferred_element_type=jnp.float32)
    ada = ada + b_ada_ref[...].astype(jnp.float32)
    H = shift_ref.shape[-1]
    shift_ref[...] = ada[:, :H]                            # chunk 0: shift
    ops_ref[...] = ada[:, H:] + 1.0                        # chunk 1: 1 + scale


def _adaln_jax(c, w_ada, b_ada2):
    """Plain-JAX fallback when W_ada is too large for a gridless Pallas call."""
    H = c.shape[-1]
    c32 = c.astype(jnp.float32)
    c_silu = c32 * jax.nn.sigmoid(c32)
    ada = jnp.dot(c_silu.astype(w_ada.dtype), w_ada,
                  preferred_element_type=jnp.float32)
    ada = ada + b_ada2.astype(jnp.float32)
    return ada[:, :H], ada[:, H:] + 1.0


# ----------------------- LayerNorm + modulate + proj ------------------------

def final_layer_kernel(shift_ref, ops_ref, x_ref, w_lin_ref, b_lin_ref, o_ref):
    # shift/ops: (1, H) f32   x: (tT, H)   w_lin: (H, D)   b_lin: (1, D)
    x = x_ref[...].astype(jnp.float32)

    # LayerNorm over hidden dim (no affine, eps=1e-6), one-pass biased variance.
    mean = jnp.mean(x, axis=-1, keepdims=True)
    mean_sq = jnp.mean(x * x, axis=-1, keepdims=True)
    var = jnp.maximum(mean_sq - mean * mean, 0.0)          # clamp: padded rows stay finite
    x_norm = (x - mean) * jax.lax.rsqrt(var + 1e-6)

    w_dtype = w_lin_ref.dtype
    if w_dtype == jnp.bfloat16:
        # bf16 modulate (bf16 VALU exists on v6e/v7x); result feeds bf16 MXU anyway.
        x_mod = (x_norm.astype(w_dtype) * ops_ref[...].astype(w_dtype)
                 + shift_ref[...].astype(w_dtype))
    else:
        x_mod = (x_norm * ops_ref[...] + shift_ref[...]).astype(w_dtype)

    # Final projection on the MXU in the weight's native dtype, f32 accumulation.
    y = jnp.dot(x_mod, w_lin_ref[...], preferred_element_type=jnp.float32)
    y = y + b_lin_ref[...].astype(jnp.float32)
    o_ref[...] = y.astype(o_ref.dtype)


# --------------------------------- wrapper ----------------------------------

def _vmem_capacity_bytes():
    """Physical per-core VMEM; conservative default (v7x) if query fails."""
    get_info = getattr(pltpu, "get_tpu_info", None)
    if get_info is not None:
        try:
            cap = getattr(get_info(), "vmem_capacity_bytes", None)
            if cap:
                return int(cap)
        except Exception:
            pass
    return 64 << 20


def _pick_tile_tokens(T, H, D, x_isize, o_isize, w_isize, budget):
    """Largest token tile whose per-step working set fits `budget` bytes."""
    def need(tt):
        return (2 * tt * H * x_isize          # double-buffered x tile
                + 2 * tt * D * o_isize        # double-buffered output tile
                + 4 * tt * H * 4              # f32 elementwise temporaries
                + H * D * w_isize + D * 4     # projection weights / bias
                + 4 * H * 4)                  # shift, (1 + scale)
    if T <= 1024 and need(T) <= budget:
        return T                              # whole-T tile (also covers tiny T)
    best = 8
    for tt in (16, 32, 64, 128, 256, 512, 1024):
        if tt <= T and need(tt) <= budget:
            best = tt
    return best


def final_layer(x, c, w_ada, b_ada, w_lin, b_lin, *, tile_tokens=None, out_dtype=None):
    """x: (N, T, H), c: (N, H) -> (N, T, D) with D = w_lin.shape[1]."""
    N, T, H = x.shape
    D = w_lin.shape[1]
    out_dtype = x.dtype if out_dtype is None else out_dtype
    o_isize = np.dtype(out_dtype).itemsize

    # Generation-aware VMEM budgeting:
    #   v5e/v6e (128 MiB physical) -> 64 MiB working-set budget, 96 MiB scoped limit
    #   v7x     ( 64 MiB physical) -> 32 MiB working-set budget, 48 MiB scoped limit
    vmem_cap = _vmem_capacity_bytes()
    vmem_budget = min(vmem_cap // 2, 64 << 20)
    vmem_limit = int(min(2 * vmem_budget, vmem_cap * 3 // 4))

    # --- adaLN branch: SiLU + Linear(H -> 2H), computed once per call --------
    b_ada2 = b_ada.reshape(1, 2 * H)
    ada_bytes = (w_ada.size * w_ada.dtype.itemsize + (c.size + 6 * N * H) * 4)
    if ada_bytes <= vmem_budget:
        shift, ops = pl.pallas_call(
            adaln_kernel,
            out_shape=(jax.ShapeDtypeStruct((N, H), jnp.float32),
                       jax.ShapeDtypeStruct((N, H), jnp.float32)),
        )(c, w_ada, b_ada2)
    else:
        # W_ada would not fit the scoped VMEM budget (large H, e.g. on v7x);
        # this branch is negligible FLOPs, so let XLA handle it.
        shift, ops = _adaln_jax(c, w_ada, b_ada2)
    shift = shift.reshape(N, 1, H)        # pure reshape (no slice copy)
    ops = ops.reshape(N, 1, H)

    # --- main kernel: LayerNorm + modulate + projection, tiled over tokens ---
    if tile_tokens is None:
        tT = _pick_tile_tokens(T, H, D, x.dtype.itemsize, o_isize,
                               w_lin.dtype.itemsize, vmem_budget)
    else:
        tT = min(int(tile_tokens), T)
        if tT < T and tT % 8 != 0:
            raise ValueError("tile_tokens must be a multiple of 8 when < T")
    n_t = pl.cdiv(T, tT)
    b_lin2 = b_lin.reshape(1, D)

    cost = pl.CostEstimate(
        flops=2 * N * T * H * D + 8 * N * T * H,
        transcendentals=N * T,
        bytes_accessed=(N * T * H * x.dtype.itemsize
                        + N * T * D * o_isize
                        + H * D * w_lin.dtype.itemsize
                        + 2 * N * H * 4 + D * 4),
    )

    return pl.pallas_call(
        final_layer_kernel,
        out_shape=jax.ShapeDtypeStruct((N, T, D), out_dtype),
        grid_spec=pltpu.PrefetchScalarGridSpec(
            num_scalar_prefetch=0,
            grid=(N, n_t),
            in_specs=[
                pl.BlockSpec((None, 1, H), lambda n, t: (n, 0, 0)),    # shift
                pl.BlockSpec((None, 1, H), lambda n, t: (n, 0, 0)),    # 1+scale
                pl.BlockSpec((None, tT, H), lambda n, t: (n, t, 0)),   # x tile
                pl.BlockSpec((H, D), lambda n, t: (0, 0)),             # W_lin
                pl.BlockSpec((1, D), lambda n, t: (0, 0)),             # b_lin
            ],
            out_specs=pl.BlockSpec((None, tT, D), lambda n, t: (n, t, 0)),
        ),
        compiler_params=pltpu.CompilerParams(
            dimension_semantics=("parallel", "parallel"),
            vmem_limit_bytes=vmem_limit),
        cost_estimate=cost,
    )(shift, ops, x, w_lin, b_lin2)


def final_layer_ref(x, c, w_ada, b_ada, w_lin, b_lin):
    """Pure-JAX reference mirroring the PyTorch forward."""
    H = x.shape[-1]
    c_silu = c * jax.nn.sigmoid(c)
    ada = c_silu @ w_ada + b_ada
    shift, scale = ada[:, :H], ada[:, H:]
    mean = jnp.mean(x, axis=-1, keepdims=True)
    var = jnp.mean((x - mean) ** 2, axis=-1, keepdims=True)
    x_norm = (x - mean) / jnp.sqrt(var + 1e-6)
    x_mod = x_norm * (1 + scale[:, None, :]) + shift[:, None, :]
    return x_mod @ w_lin + b_lin


if __name__ == "__main__":
    # Small shapes consistent with the module:
    #   hidden_size=32, patch_size=2, out_channels=4 -> out dim = 2*2*4 = 16
    N, T, H = 2, 8, 32
    patch, out_ch = 2, 4
    D = patch * patch * out_ch

    key = jax.random.PRNGKey(0)
    kx, kc, kwa, kba, kwl, kbl = jax.random.split(key, 6)

    x = jax.random.normal(kx, (N, T, H), dtype=jnp.float32)
    c = jax.random.normal(kc, (N, H), dtype=jnp.float32)

    # Deterministic synthetic parameters (adaLN Linear: H -> 2H, final Linear: H -> D).
    w_ada = jax.random.normal(kwa, (H, 2 * H), dtype=jnp.float32) * 0.02
    b_ada = jax.random.normal(kba, (2 * H,), dtype=jnp.float32) * 0.02
    w_lin = jax.random.normal(kwl, (H, D), dtype=jnp.float32) * 0.02
    b_lin = jax.random.normal(kbl, (D,), dtype=jnp.float32) * 0.02

    out = final_layer(x, c, w_ada, b_ada, w_lin, b_lin)
    out = jax.block_until_ready(out)

    ref = final_layer_ref(x, c, w_ada, b_ada, w_lin, b_lin)
    assert out.shape == (N, T, D)
    assert jnp.allclose(out, ref, atol=1e-4, rtol=1e-4), "mismatch vs reference"

    print("KERNEL_OK")
</pallas_src>

<mosaic_0001>
module attributes {stable_mosaic.version = 11 : i64} {
  func.func @adaln_kernel(%arg0: memref<2x32xf32, #tpu.memory_space<vmem>>, %arg1: memref<32x64xf32, #tpu.memory_space<vmem>>, %arg2: memref<1x64xf32, #tpu.memory_space<vmem>>, %arg3: memref<2x32xf32, #tpu.memory_space<vmem>>, %arg4: memref<2x32xf32, #tpu.memory_space<vmem>>) attributes {dimension_semantics = [], scalar_prefetch = 0 : i64, scratch_operands = 0 : i64, tpu.core_type = #tpu.core_type<tc>} {
    %c0 = arith.constant 0 : index
    %c0_0 = arith.constant 0 : index
    %0 = vector.load %arg0[%c0, %c0_0] : memref<2x32xf32, #tpu.memory_space<vmem>>, vector<2x32xf32>
    %1 = arith.negf %0 : vector<2x32xf32>
    %2 = math.exp %1 : vector<2x32xf32>
    %cst = arith.constant 1.000000e+00 : f32
    %3 = vector.broadcast %cst : f32 to vector<2x32xf32>
    %4 = arith.addf %3, %2 : vector<2x32xf32>
    %5 = arith.divf %3, %4 : vector<2x32xf32>
    %6 = arith.mulf %0, %5 : vector<2x32xf32>
    %c0_1 = arith.constant 0 : index
    %c0_2 = arith.constant 0 : index
    %7 = vector.load %arg1[%c0_1, %c0_2] : memref<32x64xf32, #tpu.memory_space<vmem>>, vector<32x64xf32>
    %cst_3 = arith.constant dense<0.000000e+00> : vector<2x64xf32>
    %8 = tpu.matmul %6, %7, %cst_3 {dimension_numbers = #tpu.dot_dimension_numbers<[1], [0], [0], [1], [0, 0, 1, 1], [], []>} : vector<2x32xf32>, vector<32x64xf32>, vector<2x64xf32> -> vector<2x64xf32>
    %c0_4 = arith.constant 0 : index
    %c0_5 = arith.constant 0 : index
    %9 = vector.load %arg2[%c0_4, %c0_5] : memref<1x64xf32, #tpu.memory_space<vmem>>, vector<1x64xf32>
    %10 = vector.broadcast %9 : vector<1x64xf32> to vector<2x64xf32>
    %11 = arith.addf %8, %10 : vector<2x64xf32>
    %12 = vector.extract_strided_slice %11 {offsets = [0, 0], sizes = [2, 32], strides = [1, 1]} : vector<2x64xf32> to vector<2x32xf32>
    %c0_6 = arith.constant 0 : index
    %c0_7 = arith.constant 0 : index
    %13 = vector.load %arg3[%c0_6, %c0_7] : memref<2x32xf32, #tpu.memory_space<vmem>>, vector<2x32xf32>
    tpu.vector_store %arg3[%c0_6, %c0_7], %12 {strides = array<i32>} : memref<2x32xf32, #tpu.memory_space<vmem>>, vector<2x32xf32>,
    %14 = vector.extract_strided_slice %11 {offsets = [0, 32], sizes = [2, 32], strides = [1, 1]} : vector<2x64xf32> to vector<2x32xf32>
    %cst_8 = arith.constant 1.000000e+00 : f32
    %15 = vector.broadcast %cst_8 : f32 to vector<2x32xf32>
    %16 = arith.addf %14, %15 : vector<2x32xf32>
    %c0_9 = arith.constant 0 : index
    %c0_10 = arith.constant 0 : index
    %17 = vector.load %arg4[%c0_9, %c0_10] : memref<2x32xf32, #tpu.memory_space<vmem>>, vector<2x32xf32>
    tpu.vector_store %arg4[%c0_9, %c0_10], %16 {strides = array<i32>} : memref<2x32xf32, #tpu.memory_space<vmem>>, vector<2x32xf32>,
    return
  }
}

</mosaic_0001>

<bundles_post_ra>
// kernel: tpu_custom_call.1
= control target key start
LH: loop header
LB: loop body
LE: loop exit
PB: predicated region body
PF: predicated region fallthrough
CT: control target
= control target key end

     0   :  { %10 = vsyncpa [#allocation3], 0  ;;  %s308_s0 = inlined_call_operand.hbm [shape: f32[2,32], index: 0, kind: input, shape index: {}]   ;;  %s309_s1 = inlined_call_operand.hbm [shape: f32[32,64], index: 1, kind: input, shape index: {}]   ;;  %s310_s2 = inlined_call_operand.vmem [shape: f32[1,64], index: 2, kind: input, shape index: {}]   ;;  %s311_s3 = inlined_call_operand.hbm [shape: f32[2,32], index: 3, kind: output, shape index: {0}]   ;;  %s312_s4 = inlined_call_operand.hbm [shape: f32[2,32], index: 4, kind: output, shape index: {1}]  }
   0x1   :  { %11 = vsyncpa [#allocation6], 0 }
   0x2   :  { %12 = vsyncpa [#allocation4], 0 }
   0x3   :  { %13 = vsyncpa [#allocation9], 0  ;;  %s19_s17 = sshll.u32 %s308_s0, 4  ;;  %s261_s18 = smov [#allocation2]   ;;  %s20_s17 = int_to_ptr.hbm [resolvable:$true] %s19_s17 }
   0x4   :  { %s21_s19 = sshll.u32 %s261_s18, 4  ;;  %s29_s22 = sshll.u32 %s309_s1, 4  ;;  %s22_s19 = int_to_ptr.vmem [resolvable:$true] %s21_s19  ;;  %s30_s22 = int_to_ptr.hbm [resolvable:$true] %s29_s22 }
   0x5   :  { %24 = dma.hbm_to_vmem [thread:$0]  %s20_s17, 32, %s22_s19, [#allocation3]  }
   0x6   :  { %s262_s23 = smov [#allocation5]   ;;  %s263_s25 = smov 128  }
   0x7   :  { %s31_s24 = sshll.u32 %s262_s23, 4  ;;  %s264_s26 = smov 8   ;;  %s32_s24 = int_to_ptr.vmem [resolvable:$true] %s31_s24 }
   0x8   :  { %37 = dma.hbm_to_vmem [thread:$0]  %s30_s22, 512, %s32_s24, [#allocation6], %s263_s25, %s263_s25, %s264_s26  }
   0x9   :  { %253 = dma.done.wait [#allocation3], 32  }
   0xa   :  { %254 = vsyncadd [#allocation3], 4294967264 }
   0xb   :  { %255 = dma.done.wait [#allocation6], 512  }
   0xc   :  { %256 = vsyncadd [#allocation6], 4294966784  ;;  %v72_v0 = vld [vmem:[#allocation5 + $0x18] sm:$0xff]  ;;  %v71_v1 = vld [vmem:[#allocation5 + $0x10] sm:$0xff]  ;;  %vm77_vm4 = vcmask 261120   ;;  %s265_s27 = smov [#allocation7]  }
   0xd   :  { %93 = vmatpush.msra.mxu0 %v72_v0  ;;  %v48_v2 = vld [vmem:[#allocation2] sm:$0x3]  ;;  %v70_v3 = vld [vmem:[#allocation5 + $0x8] sm:$0xff]  ;;  %v69_v5 = vld [vmem:[#allocation5] sm:$0xff]  ;;  %s114_s28 = sshll.u32 %s265_s27, 4  ;;  %s116_s5 = sshll.u32 %s311_s3, 4  ;;  %s115_s28 = int_to_ptr.vmem [resolvable:$true] %s114_s28  ;;  %s117_s5 = int_to_ptr.hbm [resolvable:$true] %s116_s5 }
   0xe   :  { %v143_v4 = vmul.f32 -1.442695, %v48_v2  ;;  %v152_v19 = vld [vmem:[%s310_s2] ss:$0 sm:$0xff]  ;;  %vm101_vm5 = vcmask 254976   ;;  %s266_s6 = smov 96  }
   0xf   :  { %94 = vmatpush.msra.mxu0 %v71_v1  ;;  %s267_s7 = smov [#allocation8]   ;;  %s127_s10 = sshll.u32 %s312_s4, 4  ;;  %s128_s10 = int_to_ptr.hbm [resolvable:$true] %s127_s10 }
  0x10   :  { %153 = vpow2.f32 %v143_v4  ;;  %s125_s8 = sshll.u32 %s267_s7, 4  ;;  %s126_s8 = int_to_ptr.vmem [resolvable:$true] %s125_s8 }
  0x11   :  { %95 = vmatpush.msra.mxu0 %v70_v3 }
  0x13   :  { %96 = vmatpush.msra.mxu0 %v69_v5 }
  0x16   :  { %v154_v6 = vpop.eup %153 }
  0x17   :  { %v52_v7 = vadd.f32 1.0, %v154_v6 }
  0x19   :  { %155 = vrcp.f32 %v52_v7  ;;  %v64_v10 = vand.u32 2147483648, %v52_v7  ;;  %vm58_vm0 = vweird.f32 %v52_v7  ;;  %v62_v12 = vand.u32 2147483647, %v52_v7 }
  0x1b   :  { %v65_v14 = vor.u32 1.1754944e-38, %v64_v10  ;;  %vm63_vm3 = vcmp.eq.f32.partialorder %v62_v12, 8.507059e+37 }
  0x1f   :  { %v156_v8 = vpop.eup %155 }
  0x20   :  { %v54_v9 = vmul.f32 %v156_v8, %v52_v7  ;;  %vm59_vm1 = vweird.f32 %v156_v8 }
  0x21   :  { %vm60_vm2 = vmor %vm58_vm0, %vm59_vm1 }
  0x22   :  { %v55_v11 = vsub.f32 1.0, %v54_v9 }
  0x24   :  { %v56_v13 = vmul.f32 %v156_v8, %v55_v11 }
  0x26   :  { %v57_v15 = vadd.f32 %v156_v8, %v56_v13 }
  0x28   :  { %v61_v16 = vsel %vm60_vm2, %v156_v8, %v57_v15 }
  0x29   :  { %v66_v17 = vsel %vm63_vm3, %v65_v14, %v61_v16 }
  0x2a   :  { %v68_v18 = vmul.f32 %v66_v17, %v48_v2 }
  0x2c   :  { %144 = vmatmul.msk.f32.vlgmr.msra.gmra.mxu0 %vm77_vm4, %v68_v18 }
  0xa9   :  { %v98_v20 = vpop.f32.mrf.mxu0 }
  0xaa   :  { %v99_v21 = vadd.f32 %v152_v19, %v98_v20 }
  0xac   :  { %v103_v22 = vadd.f32 1.0, %v99_v21  ;;  %102 = vst.msk [vmem:[#allocation7] sm:$0x3] %vm101_vm5, %v99_v21 }
  0xad   :  { %119 = dma.vmem_to_hbm [thread:$0]  %s115_s28, 32, %s117_s5, [#allocation4]  }
  0xae   :  { %105 = vrot.lane.b32.xlu0 %v103_v22, %s266_s6 }
 0x120   :  { %v106_v23 = vpop.permute.xlu0 %105 }
 0x121   :  { %108 = vst.msk [vmem:[#allocation8] sm:$0x3] %vm101_vm5, %v106_v23 }
 0x122   :  { %130 = dma.vmem_to_hbm [thread:$0]  %s126_s8, 32, %s128_s10, [#allocation9]  }
 0x123   :  { %257 = dma.done.wait [#allocation4], 32  }
 0x124   :  { %258 = vsyncadd [#allocation4], 4294967264 }
 0x125   :  { %259 = dma.done.wait [#allocation9], 32  }
 0x126   :  { %260 = vsyncadd [#allocation9], 4294967264 }
 0x127   :  { %139 = vsyncpa [#allocation3], 1 }
 0x128   :  { %140 = vsyncpa [#allocation6], 1 }
 0x129   :  { %141 = vsyncpa [#allocation4], 1 }
 0x12a   :  { %142 = vsyncpa [#allocation9], 1 }

</bundles_post_ra>
